<compile_context>
chip_gen: v5e
topology: v5e:2x2
jax: 0.10.0
libtpu: 0.0.40
codegen_flags: <defaults>
</compile_context>

<pallas_src>
import functools

import jax
import jax.numpy as jnp
from jax.experimental import pallas as pl
from jax.experimental.pallas import tpu as pltpu


def _round_up(x, m):
    return ((x + m - 1) // m) * m


def _rel_pos_fusion_kernel(*refs, w_offsets, w_sizes):
    """relu( sum_i pos_i @ W_stack[off_i:off_i+sz_i, :] + bias ) for one row tile.

    refs = (pos_0, ..., pos_{n-1}, w_stack, bias, out)
    w_stack holds the per-pos (block-diagonal when row-folded) weight chunks
    stacked along rows; static slices select each chunk in VMEM.
    """
    n = len(w_sizes)
    pos_refs = refs[:n]
    w_ref = refs[n]
    b_ref = refs[n + 1]
    o_ref = refs[n + 2]

    acc = None
    for p_ref, off, sz in zip(pos_refs, w_offsets, w_sizes):
        part = jnp.dot(p_ref[...], w_ref[off:off + sz, :],
                       preferred_element_type=jnp.float32)
        acc = part if acc is None else acc + part
    acc = acc + b_ref[...].astype(jnp.float32)      # bias once, in the epilogue
    o_ref[...] = jnp.maximum(acc, 0.0).astype(o_ref.dtype)


def rel_position_fusion(pos_list, weight, bias, *, row_tile=4096):
    """pos_list: arrays with identical leading dims, last dim = dim_pos_i.
    weight: (hidden, sum(dim_pos_i))  -- PyTorch nn.Linear layout (out, in).
    bias:   (hidden,).
    Returns relu(concat(pos_list, -1) @ weight.T + bias), leading dims preserved.
    """
    num_pos = len(pos_list)
    lead_shape = pos_list[0].shape[:-1]
    dims = [int(p.shape[-1]) for p in pos_list]
    K = sum(dims)
    hidden = int(weight.shape[0])
    assert weight.shape == (hidden, K)

    in_dtype = pos_list[0].dtype
    out_dtype = in_dtype
    M = 1
    for s in lead_shape:
        M *= int(s)

    # ---- lane-dense row folding --------------------------------------------
    # dim_pos << 128 leaves vregs/VMEM tiles mostly padded and vld/vst masked.
    # Fold `fold` consecutive rows into the lane axis (free contiguous reshape)
    # and use block-diagonal weights kron(I_fold, w_i) so every DMA, load and
    # store is 128-lane dense.  Fold only when it divides cleanly.
    d0 = dims[0]
    fold = 1
    if all(d == d0 for d in dims) and 0 < d0 < 128 and 128 % d0 == 0:
        f = 128 // d0
        if M % f == 0:
            fold = f

    Mp = M // fold
    npack = fold * hidden
    dpacks = [fold * d for d in dims]

    packed = [p.reshape(Mp, fold * d) for p, d in zip(pos_list, dims)]

    # One stacked grid-invariant weight (per-pos chunks along rows).
    w_t = weight.T.astype(in_dtype)                        # (K, hidden)
    eye_f = jnp.eye(fold, dtype=w_t.dtype)
    chunks = []
    off = 0
    for d in dims:
        w_i = w_t[off:off + d, :]                          # (d, hidden)
        chunks.append(jnp.kron(eye_f, w_i) if fold > 1 else w_i)
        off += d
    w_stack = jnp.concatenate(chunks, axis=0)              # (sum(dpacks), npack)
    w_offsets, w_sizes = [], []
    o = 0
    for dp in dpacks:
        w_offsets.append(o)
        w_sizes.append(dp)
        o += dp
    total_w_rows = o

    b_pack = jnp.tile(bias.astype(jnp.float32), (fold,)).reshape(1, npack)

    # ---- row tiling (no input padding, ragged last block handled by Pallas) --
    rt = max(8, int(row_tile) // fold)
    rt = _round_up(rt, 8)
    # Keep >= 8 grid steps for moderate/large inputs so v7x's two TensorCores
    # both get work and the pipeline has something to overlap.
    if Mp >= 8 * 256:
        rt = min(rt, _round_up(pl.cdiv(Mp, 8), 8))
    if rt >= Mp:
        rt = Mp                       # single full block
    grid = (pl.cdiv(Mp, rt),)

    pos_specs = [pl.BlockSpec((rt, dp), lambda m: (m, 0)) for dp in dpacks]
    w_spec = pl.BlockSpec((total_w_rows, npack), lambda m: (0, 0),
                          pipeline_mode=pl.Buffered(1))
    b_spec = pl.BlockSpec((1, npack), lambda m: (0, 0),
                          pipeline_mode=pl.Buffered(1))
    out_spec = pl.BlockSpec((rt, npack), lambda m: (m, 0))

    # ---- VMEM budget: computed from lane-padded block sizes, v7x-safe cap ----
    in_bytes = jnp.dtype(in_dtype).itemsize
    out_bytes = jnp.dtype(out_dtype).itemsize
    lane = lambda n: _round_up(n, 128)
    sub = lambda n: _round_up(max(n, 1), 8)
    blk_bytes = (
        2 * sum(sub(rt) * lane(dp) * in_bytes for dp in dpacks)   # pos, dbl-buf
        + 2 * sub(rt) * lane(npack) * out_bytes                   # out, dbl-buf
        + sub(total_w_rows) * lane(npack) * in_bytes              # weight, 1 buf
        + 8 * lane(npack) * 4                                     # bias
    )
    vmem_limit = int(min(max(blk_bytes + (8 << 20), 16 << 20), 48 << 20))

    cost = pl.CostEstimate(
        flops=2 * M * K * hidden,
        transcendentals=0,
        bytes_accessed=(M * K) * in_bytes + (M * hidden) * out_bytes
                       + total_w_rows * npack * in_bytes + npack * 4,
    )

    out = pl.pallas_call(
        functools.partial(_rel_pos_fusion_kernel,
                          w_offsets=tuple(w_offsets), w_sizes=tuple(w_sizes)),
        out_shape=jax.ShapeDtypeStruct((Mp, npack), out_dtype),
        grid_spec=pltpu.PrefetchScalarGridSpec(
            num_scalar_prefetch=0,
            grid=grid,
            in_specs=pos_specs + [w_spec, b_spec],
            out_specs=out_spec,
        ),
        compiler_params=pltpu.CompilerParams(
            dimension_semantics=("parallel",),
            vmem_limit_bytes=vmem_limit),
        cost_estimate=cost,
    )(*packed, w_stack, b_pack)

    # (Mp, fold*hidden) row-major == (M, hidden) row-major: free reshape back.
    return out.reshape(*lead_shape, hidden)


def reference(pos_list, weight, bias):
    pe = jnp.concatenate(pos_list, axis=-1)
    h = jnp.einsum("...k,hk->...h", pe, weight) + bias
    return jnp.maximum(h, 0.0)


if __name__ == "__main__":
    # config: dim_pos=32, num_pos=4, hidden_size=32; pos tensors are the usual
    # (batch, seq, seq, dim_pos) relative-position embeddings.
    batch, seq, dim_pos, num_pos, hidden = 2, 8, 32, 4, 32
    K = dim_pos * num_pos

    key = jax.random.PRNGKey(0)
    keys = jax.random.split(key, num_pos + 2)
    pos = [jax.random.normal(keys[i], (batch, seq, seq, dim_pos), jnp.float32)
           for i in range(num_pos)]

    # nn.Linear(K, hidden): weight (out, in), bias (out,)
    bound = 1.0 / (K ** 0.5)
    weight = jax.random.uniform(keys[num_pos], (hidden, K), jnp.float32,
                                -bound, bound)
    bias = jax.random.uniform(keys[num_pos + 1], (hidden,), jnp.float32,
                              -bound, bound)

    out = rel_position_fusion(pos, weight, bias)
    out = jax.block_until_ready(out)

    ref = reference(pos, weight, bias)
    assert out.shape == (batch, seq, seq, hidden)
    assert jnp.allclose(out, ref, atol=1e-5, rtol=1e-5), "mismatch vs reference"

    print("KERNEL_OK")
</pallas_src>

<mosaic_0001>
module attributes {stable_mosaic.version = 11 : i64} {
  func.func @_rel_pos_fusion_kernel(%arg0: i32, %arg1: memref<32x128xf32, #tpu.memory_space<vmem>>, %arg2: memref<32x128xf32, #tpu.memory_space<vmem>>, %arg3: memref<32x128xf32, #tpu.memory_space<vmem>>, %arg4: memref<32x128xf32, #tpu.memory_space<vmem>>, %arg5: memref<512x128xf32, #tpu.memory_space<vmem>>, %arg6: memref<1x128xf32, #tpu.memory_space<vmem>>, %arg7: memref<32x128xf32, #tpu.memory_space<vmem>>) attributes {dimension_semantics = [#tpu.dimension_semantics<parallel>], iteration_bounds = array<i64: 1>, scalar_prefetch = 0 : i64, scratch_operands = 0 : i64, tpu.core_type = #tpu.core_type<tc>, window_params = [{transform_indices = @transform_0, window_bounds = array<i64: 32, 128>}, {transform_indices = @transform_1, window_bounds = array<i64: 32, 128>}, {transform_indices = @transform_2, window_bounds = array<i64: 32, 128>}, {transform_indices = @transform_3, window_bounds = array<i64: 32, 128>}, {pipeline_mode = #tpu.pipeline_mode<synchronous>, transform_indices = @transform_4, window_bounds = array<i64: 512, 128>}, {pipeline_mode = #tpu.pipeline_mode<synchronous>, transform_indices = @transform_5, window_bounds = array<i64: 1, 128>}, {transform_indices = @transform_6, window_bounds = array<i64: 32, 128>}]} {
    %c0 = arith.constant 0 : index
    %c0_0 = arith.constant 0 : index
    %0 = vector.load %arg1[%c0, %c0_0] : memref<32x128xf32, #tpu.memory_space<vmem>>, vector<32x128xf32>
    %c0_1 = arith.constant 0 : index
    %c0_2 = arith.constant 0 : index
    %1 = vector.load %arg5[%c0_1, %c0_2] : memref<512x128xf32, #tpu.memory_space<vmem>>, vector<128x128xf32>
    %cst = arith.constant dense<0.000000e+00> : vector<32x128xf32>
    %2 = tpu.matmul %0, %1, %cst {dimension_numbers = #tpu.dot_dimension_numbers<[1], [0], [0], [1], [0, 0, 1, 1], [], []>} : vector<32x128xf32>, vector<128x128xf32>, vector<32x128xf32> -> vector<32x128xf32>
    %c0_3 = arith.constant 0 : index
    %c0_4 = arith.constant 0 : index
    %3 = vector.load %arg2[%c0_3, %c0_4] : memref<32x128xf32, #tpu.memory_space<vmem>>, vector<32x128xf32>
    %c128 = arith.constant 128 : index
    %c0_5 = arith.constant 0 : index
    %4 = vector.load %arg5[%c128, %c0_5] : memref<512x128xf32, #tpu.memory_space<vmem>>, vector<128x128xf32>
    %cst_6 = arith.constant dense<0.000000e+00> : vector<32x128xf32>
    %5 = tpu.matmul %3, %4, %cst_6 {dimension_numbers = #tpu.dot_dimension_numbers<[1], [0], [0], [1], [0, 0, 1, 1], [], []>} : vector<32x128xf32>, vector<128x128xf32>, vector<32x128xf32> -> vector<32x128xf32>
    %6 = arith.addf %2, %5 : vector<32x128xf32>
    %c0_7 = arith.constant 0 : index
    %c0_8 = arith.constant 0 : index
    %7 = vector.load %arg3[%c0_7, %c0_8] : memref<32x128xf32, #tpu.memory_space<vmem>>, vector<32x128xf32>
    %c256 = arith.constant 256 : index
    %c0_9 = arith.constant 0 : index
    %8 = vector.load %arg5[%c256, %c0_9] : memref<512x128xf32, #tpu.memory_space<vmem>>, vector<128x128xf32>
    %cst_10 = arith.constant dense<0.000000e+00> : vector<32x128xf32>
    %9 = tpu.matmul %7, %8, %cst_10 {dimension_numbers = #tpu.dot_dimension_numbers<[1], [0], [0], [1], [0, 0, 1, 1], [], []>} : vector<32x128xf32>, vector<128x128xf32>, vector<32x128xf32> -> vector<32x128xf32>
    %10 = arith.addf %6, %9 : vector<32x128xf32>
    %c0_11 = arith.constant 0 : index
    %c0_12 = arith.constant 0 : index
    %11 = vector.load %arg4[%c0_11, %c0_12] : memref<32x128xf32, #tpu.memory_space<vmem>>, vector<32x128xf32>
    %c384 = arith.constant 384 : index
    %c0_13 = arith.constant 0 : index
    %12 = vector.load %arg5[%c384, %c0_13] : memref<512x128xf32, #tpu.memory_space<vmem>>, vector<128x128xf32>
    %cst_14 = arith.constant dense<0.000000e+00> : vector<32x128xf32>
    %13 = tpu.matmul %11, %12, %cst_14 {dimension_numbers = #tpu.dot_dimension_numbers<[1], [0], [0], [1], [0, 0, 1, 1], [], []>} : vector<32x128xf32>, vector<128x128xf32>, vector<32x128xf32> -> vector<32x128xf32>
    %14 = arith.addf %10, %13 : vector<32x128xf32>
    %c0_15 = arith.constant 0 : index
    %c0_16 = arith.constant 0 : index
    %15 = vector.load %arg6[%c0_15, %c0_16] : memref<1x128xf32, #tpu.memory_space<vmem>>, vector<1x128xf32>
    %16 = vector.broadcast %15 : vector<1x128xf32> to vector<32x128xf32>
    %17 = arith.addf %14, %16 : vector<32x128xf32>
    %cst_17 = arith.constant 0.000000e+00 : f32
    %18 = vector.broadcast %cst_17 : f32 to vector<32x128xf32>
    %19 = arith.maximumf %17, %18 : vector<32x128xf32>
    %c0_18 = arith.constant 0 : index
    %c0_19 = arith.constant 0 : index
    %20 = vector.load %arg7[%c0_18, %c0_19] : memref<32x128xf32, #tpu.memory_space<vmem>>, vector<32x128xf32>
    tpu.vector_store %arg7[%c0_18, %c0_19], %19 {strides = array<i32>} : memref<32x128xf32, #tpu.memory_space<vmem>>, vector<32x128xf32>,
    return
  }
  func.func @transform_0(%arg0: i32) -> (i32, i32) {
    %c0_i32 = arith.constant 0 : i32
    %c0_i32_0 = arith.constant 0 : i32
    return %arg0, %c0_i32 : i32, i32
  }
  func.func @transform_1(%arg0: i32) -> (i32, i32) {
    %c0_i32 = arith.constant 0 : i32
    %c0_i32_0 = arith.constant 0 : i32
    return %arg0, %c0_i32 : i32, i32
  }
  func.func @transform_2(%arg0: i32) -> (i32, i32) {
    %c0_i32 = arith.constant 0 : i32
    %c0_i32_0 = arith.constant 0 : i32
    return %arg0, %c0_i32 : i32, i32
  }
  func.func @transform_3(%arg0: i32) -> (i32, i32) {
    %c0_i32 = arith.constant 0 : i32
    %c0_i32_0 = arith.constant 0 : i32
    return %arg0, %c0_i32 : i32, i32
  }
  func.func @transform_4(%arg0: i32) -> (i32, i32) {
    %c0_i32 = arith.constant 0 : i32
    %c0_i32_0 = arith.constant 0 : i32
    %c0_i32_1 = arith.constant 0 : i32
    return %c0_i32, %c0_i32_0 : i32, i32
  }
  func.func @transform_5(%arg0: i32) -> (i32, i32) {
    %c0_i32 = arith.constant 0 : i32
    %c0_i32_0 = arith.constant 0 : i32
    %c0_i32_1 = arith.constant 0 : i32
    return %c0_i32, %c0_i32_0 : i32, i32
  }
  func.func @transform_6(%arg0: i32) -> (i32, i32) {
    %c0_i32 = arith.constant 0 : i32
    %c0_i32_0 = arith.constant 0 : i32
    return %arg0, %c0_i32 : i32, i32
  }
}

</mosaic_0001>

<bundles_post_ra>
// kernel: tpu_custom_call.1
= control target key start
LH: loop header
LB: loop body
LE: loop exit
PB: predicated region body
PF: predicated region fallthrough
CT: control target
= control target key end

     0   :  { %11 = vsyncpa [#allocation3], 0  ;;  %s586_s0 = inlined_call_operand.hbm [shape: f32[32,128], index: 0, kind: input, shape index: {}]   ;;  %s587_s1 = inlined_call_operand.hbm [shape: f32[32,128], index: 1, kind: input, shape index: {}]   ;;  %s588_s2 = inlined_call_operand.hbm [shape: f32[32,128], index: 2, kind: input, shape index: {}]   ;;  %s589_s3 = inlined_call_operand.hbm [shape: f32[32,128], index: 3, kind: input, shape index: {}]   ;;  %s590_s4 = inlined_call_operand.hbm [shape: f32[512,128], index: 4, kind: input, shape index: {}]   ;;  %s591_s5 = inlined_call_operand.vmem [shape: f32[1,128], index: 5, kind: input, shape index: {}]   ;;  %s592_s6 = inlined_call_operand.hbm [shape: f32[32,128], index: 6, kind: output, shape index: {}]  }
   0x1   :  { %12 = vsyncpa [#allocation6], 0 }
   0x2   :  { %13 = vsyncpa [#allocation9], 0 }
   0x3   :  { %14 = vsyncpa [#allocation4], 0  ;;  %s32_s23 = sshll.u32 %s587_s1, 4  ;;  %s504_s24 = smov [#allocation5]   ;;  %s33_s23 = int_to_ptr.hbm [resolvable:$true] %s32_s23 }
   0x4   :  { %s34_s25 = sshll.u32 %s504_s24, 4  ;;  %s58_s28 = sshll.u32 %s589_s3, 4  ;;  %s35_s25 = int_to_ptr.vmem [resolvable:$true] %s34_s25  ;;  %s59_s28 = int_to_ptr.hbm [resolvable:$true] %s58_s28 }
   0x5   :  { %s505_s29 = smov 128   ;;  %s506_s30 = smov 8  }
   0x6   :  { %40 = dma.hbm_to_vmem [thread:$0]  %s33_s23, 512, %s35_s25, [#allocation6], %s505_s29, %s505_s29, %s506_s30  }
   0x7   :  { %s507_s7 = smov [#allocation8]   ;;  %s19_s1 = sshll.u32 %s586_s0, 4  ;;  %s20_s1 = int_to_ptr.hbm [resolvable:$true] %s19_s1 }
   0x8   :  { %s60_s8 = sshll.u32 %s507_s7, 4  ;;  %s45_s12 = sshll.u32 %s588_s2, 4  ;;  %s61_s8 = int_to_ptr.vmem [resolvable:$true] %s60_s8  ;;  %s46_s12 = int_to_ptr.hbm [resolvable:$true] %s45_s12 }
   0x9   :  { %66 = dma.hbm_to_vmem [thread:$0]  %s59_s28, 512, %s61_s8, [#allocation9], %s505_s29, %s505_s29, %s506_s30  }
   0xa   :  { %s508_s13 = smov [#allocation2]   ;;  %s509_s15 = smov [#allocation7]  }
   0xb   :  { %s21_s14 = sshll.u32 %s508_s13, 4  ;;  %s47_s0 = sshll.u32 %s509_s15, 4  ;;  %s22_s14 = int_to_ptr.vmem [resolvable:$true] %s21_s14  ;;  %s48_s0 = int_to_ptr.vmem [resolvable:$true] %s47_s0 }
   0xc   :  { %27 = dma.hbm_to_vmem [thread:$0]  %s20_s1, 512, %s22_s14, [#allocation3], %s505_s29, %s505_s29, %s506_s30  }
   0xd   :  { %s71_s18 = sshll.u32 %s590_s4, 4  ;;  %s510_s2 = smov [#allocation10]   ;;  %s72_s18 = int_to_ptr.hbm [resolvable:$true] %s71_s18 }
   0xe   :  { %53 = dma.hbm_to_vmem [thread:$0]  %s46_s12, 512, %s48_s0, [#allocation6], %s505_s29, %s505_s29, %s506_s30  }
   0xf   :  { %s73_s19 = sshll.u32 %s510_s2, 4  ;;  %s74_s19 = int_to_ptr.vmem [resolvable:$true] %s73_s19 }
  0x10   :  { %79 = dma.hbm_to_vmem [thread:$0]  %s72_s18, 8192, %s74_s19, [#allocation9], %s505_s29, %s505_s29, %s506_s30  }
  0x11   :  { %496 = dma.done.wait [#allocation3], 512  }
  0x12   :  { %497 = vsyncadd [#allocation3], 4294966784 }
  0x13   :  { %498 = dma.done.wait [#allocation6], 1024  }
  0x14   :  { %499 = vsyncadd [#allocation6], 4294966272 }
  0x15   :  { %500 = dma.done.wait [#allocation9], 8704  }
  0x16   :  { %501 = vsyncadd [#allocation9], 4294958592  ;;  %v219_v0 = vld [vmem:[#allocation10 + $0x178] sm:$0xff]  ;;  %v218_v1 = vld [vmem:[#allocation10 + $0x170] sm:$0xff]  ;;  %s328_s24 = sshll.u32 %s592_s6, 4  ;;  %s329_s24 = int_to_ptr.hbm [resolvable:$true] %s328_s24 }
  0x17   :  { %v272_v2 = vld [vmem:[#allocation10 + $0x1f8] sm:$0xff]  ;;  %220 = vmatpush.msra.mxu2 %v219_v0  ;;  %v217_v5 = vld [vmem:[#allocation10 + $0x168] sm:$0xff]  ;;  %v271_v6 = vld [vmem:[#allocation10 + $0x1f0] sm:$0xff] }
  0x18   :  { %273 = vmatpush.msra.mxu3 %v272_v2  ;;  %v141_v3 = vld [vmem:[#allocation10 + $0xf8] sm:$0xff]  ;;  %v140_v7 = vld [vmem:[#allocation10 + $0xf0] sm:$0xff]  ;;  %v270_v9 = vld [vmem:[#allocation10 + $0x1e8] sm:$0xff] }
  0x19   :  { %v121_v4 = vld [vmem:[#allocation10 + $0x78] sm:$0xff]  ;;  %142 = vmatpush.msra.mxu0 %v141_v3  ;;  %v120_v8 = vld [vmem:[#allocation10 + $0x70] sm:$0xff]  ;;  %221 = vmatpush.msra.mxu2 %v218_v1  ;;  %v139_v10 = vld [vmem:[#allocation10 + $0xe8] sm:$0xff] }
  0x1a   :  { %171 = vmatpush.msra.mxu1 %v121_v4  ;;  %274 = vmatpush.msra.mxu3 %v271_v6  ;;  %v216_v11 = vld [vmem:[#allocation10 + $0x160] sm:$0xff]  ;;  %v119_v12 = vld [vmem:[#allocation10 + $0x68] sm:$0xff]  ;;  %v215_v16 = vld [vmem:[#allocation10 + $0x158] sm:$0xff] }
  0x1b   :  { %143 = vmatpush.msra.mxu0 %v140_v7  ;;  %v269_v13 = vld [vmem:[#allocation10 + $0x1e0] sm:$0xff]  ;;  %222 = vmatpush.msra.mxu2 %v217_v5  ;;  %v268_v17 = vld [vmem:[#allocation10 + $0x1d8] sm:$0xff]  ;;  %v214_v20 = vld [vmem:[#allocation10 + $0x150] sm:$0xff] }
  0x1c   :  { %172 = vmatpush.msra.mxu1 %v120_v8  ;;  %275 = vmatpush.msra.mxu3 %v270_v9  ;;  %v138_v14 = vld [vmem:[#allocation10 + $0xe0] sm:$0xff]  ;;  %v137_v18 = vld [vmem:[#allocation10 + $0xd8] sm:$0xff]  ;;  %v267_v21 = vld [vmem:[#allocation10 + $0x1d0] sm:$0xff] }
  0x1d   :  { %v118_v15 = vld [vmem:[#allocation10 + $0x60] sm:$0xff]  ;;  %144 = vmatpush.msra.mxu0 %v139_v10  ;;  %223 = vmatpush.msra.mxu2 %v216_v11  ;;  %v117_v19 = vld [vmem:[#allocation10 + $0x58] sm:$0xff]  ;;  %v136_v22 = vld [vmem:[#allocation10 + $0xd0] sm:$0xff] }
  0x1e   :  { %173 = vmatpush.msra.mxu1 %v119_v12  ;;  %276 = vmatpush.msra.mxu3 %v269_v13  ;;  %v116_v23 = vld [vmem:[#allocation10 + $0x50] sm:$0xff]  ;;  %v213_v24 = vld [vmem:[#allocation10 + $0x148] sm:$0xff]  ;;  %v212_v28 = vld [vmem:[#allocation10 + $0x140] sm:$0xff] }
  0x1f   :  { %145 = vmatpush.msra.mxu0 %v138_v14  ;;  %224 = vmatpush.msra.mxu2 %v215_v16  ;;  %v266_v25 = vld [vmem:[#allocation10 + $0x1c8] sm:$0xff]  ;;  %v265_v29 = vld [vmem:[#allocation10 + $0x1c0] sm:$0xff]  ;;  %v211_v32 = vld [vmem:[#allocation10 + $0x138] sm:$0xff] }
  0x20   :  { %174 = vmatpush.msra.mxu1 %v118_v15  ;;  %277 = vmatpush.msra.mxu3 %v268_v17  ;;  %v135_v26 = vld [vmem:[#allocation10 + $0xc8] sm:$0xff]  ;;  %v134_v30 = vld [vmem:[#allocation10 + $0xc0] sm:$0xff]  ;;  %v264_v33 = vld [vmem:[#allocation10 + $0x1b8] sm:$0xff] }
  0x21   :  { %146 = vmatpush.msra.mxu0 %v137_v18  ;;  %225 = vmatpush.msra.mxu2 %v214_v20  ;;  %v115_v27 = vld [vmem:[#allocation10 + $0x48] sm:$0xff]  ;;  %v114_v31 = vld [vmem:[#allocation10 + $0x40] sm:$0xff]  ;;  %v133_v34 = vld [vmem:[#allocation10 + $0xb8] sm:$0xff] }
  0x22   :  { %175 = vmatpush.msra.mxu1 %v117_v19  ;;  %278 = vmatpush.msra.mxu3 %v267_v21  ;;  %v113_v35 = vld [vmem:[#allocation10 + $0x38] sm:$0xff]  ;;  %v210_v36 = vld [vmem:[#allocation10 + $0x130] sm:$0xff]  ;;  %v209_v40 = vld [vmem:[#allocation10 + $0x128] sm:$0xff] }
  0x23   :  { %147 = vmatpush.msra.mxu0 %v136_v22  ;;  %226 = vmatpush.msra.mxu2 %v213_v24  ;;  %v263_v37 = vld [vmem:[#allocation10 + $0x1b0] sm:$0xff]  ;;  %v262_v41 = vld [vmem:[#allocation10 + $0x1a8] sm:$0xff]  ;;  %v208_v44 = vld [vmem:[#allocation10 + $0x120] sm:$0xff] }
  0x24   :  { %176 = vmatpush.msra.mxu1 %v116_v23  ;;  %279 = vmatpush.msra.mxu3 %v266_v25  ;;  %v132_v38 = vld [vmem:[#allocation10 + $0xb0] sm:$0xff]  ;;  %v131_v42 = vld [vmem:[#allocation10 + $0xa8] sm:$0xff]  ;;  %v261_v45 = vld [vmem:[#allocation10 + $0x1a0] sm:$0xff] }
  0x25   :  { %148 = vmatpush.msra.mxu0 %v135_v26  ;;  %227 = vmatpush.msra.mxu2 %v212_v28  ;;  %v112_v39 = vld [vmem:[#allocation10 + $0x30] sm:$0xff]  ;;  %v111_v43 = vld [vmem:[#allocation10 + $0x28] sm:$0xff]  ;;  %v130_v46 = vld [vmem:[#allocation10 + $0xa0] sm:$0xff] }
  0x26   :  { %177 = vmatpush.msra.mxu1 %v115_v27  ;;  %280 = vmatpush.msra.mxu3 %v265_v29  ;;  %v110_v47 = vld [vmem:[#allocation10 + $0x20] sm:$0xff]  ;;  %v207_v48 = vld [vmem:[#allocation10 + $0x118] sm:$0xff]  ;;  %v206_v52 = vld [vmem:[#allocation10 + $0x110] sm:$0xff] }
  0x27   :  { %149 = vmatpush.msra.mxu0 %v134_v30  ;;  %228 = vmatpush.msra.mxu2 %v211_v32  ;;  %v260_v49 = vld [vmem:[#allocation10 + $0x198] sm:$0xff]  ;;  %v259_v53 = vld [vmem:[#allocation10 + $0x190] sm:$0xff]  ;;  %v205_v56 = vld [vmem:[#allocation10 + $0x108] sm:$0xff] }
  0x28   :  { %178 = vmatpush.msra.mxu1 %v114_v31  ;;  %281 = vmatpush.msra.mxu3 %v264_v33  ;;  %v129_v50 = vld [vmem:[#allocation10 + $0x98] sm:$0xff]  ;;  %v128_v54 = vld [vmem:[#allocation10 + $0x90] sm:$0xff]  ;;  %v258_v57 = vld [vmem:[#allocation10 + $0x188] sm:$0xff] }
  0x29   :  { %150 = vmatpush.msra.mxu0 %v133_v34  ;;  %229 = vmatpush.msra.mxu2 %v210_v36  ;;  %v109_v51 = vld [vmem:[#allocation10 + $0x18] sm:$0xff]  ;;  %v108_v55 = vld [vmem:[#allocation10 + $0x10] sm:$0xff]  ;;  %v127_v58 = vld [vmem:[#allocation10 + $0x88] sm:$0xff] }
  0x2a   :  { %179 = vmatpush.msra.mxu1 %v113_v35  ;;  %282 = vmatpush.msra.mxu3 %v263_v37  ;;  %v107_v59 = vld [vmem:[#allocation10 + $0x8] sm:$0xff]  ;;  %v204_v60 = vld [vmem:[#allocation10 + $0x100] sm:$0xff]  ;;  %v202_v8 = vld [vmem:[#allocation7 + $0x10] sm:$0xff] }
  0x2b   :  { %151 = vmatpush.msra.mxu0 %v132_v38  ;;  %230 = vmatpush.msra.mxu2 %v209_v40  ;;  %v257_v61 = vld [vmem:[#allocation10 + $0x180] sm:$0xff]  ;;  %v201_v4 = vld [vmem:[#allocation7 + $0x8] sm:$0xff]  ;;  %v255_v9 = vld [vmem:[#allocation8 + $0x10] sm:$0xff] }
  0x2c   :  { %180 = vmatpush.msra.mxu1 %v112_v39  ;;  %283 = vmatpush.msra.mxu3 %v262_v41  ;;  %v200_v62 = vld [vmem:[#allocation7] sm:$0xff]  ;;  %v254_v5 = vld [vmem:[#allocation8 + $0x8] sm:$0xff]  ;;  %v124_v10 = vld [vmem:[#allocation5 + $0x10] sm:$0xff] }
  0x2d   :  { %152 = vmatpush.msra.mxu0 %v131_v42  ;;  %231 = vmatpush.msra.mxu2 %v208_v44  ;;  %v253_v63 = vld [vmem:[#allocation8] sm:$0xff]  ;;  %v123_v6 = vld [vmem:[#allocation5 + $0x8] sm:$0xff]  ;;  %v104_v11 = vld [vmem:[#allocation2 + $0x10] sm:$0xff] }
  0x2e   :  { %181 = vmatpush.msra.mxu1 %v111_v43  ;;  %284 = vmatpush.msra.mxu3 %v261_v45  ;;  %v126_v0 = vld [vmem:[#allocation10 + $0x80] sm:$0xff]  ;;  %v103_v7 = vld [vmem:[#allocation2 + $0x8] sm:$0xff]  ;;  %v203_v12 = vld [vmem:[#allocation7 + $0x18] sm:$0xff] }
  0x2f   :  { %153 = vmatpush.msra.mxu0 %v130_v46  ;;  %232 = vmatpush.msra.mxu2 %v207_v48  ;;  %v106_v1 = vld [vmem:[#allocation10] sm:$0xff]  ;;  %v256_v13 = vld [vmem:[#allocation8 + $0x18] sm:$0xff] }
  0x30   :  { %182 = vmatpush.msra.mxu1 %v110_v47  ;;  %285 = vmatpush.msra.mxu3 %v260_v49  ;;  %v122_v2 = vld [vmem:[#allocation5] sm:$0xff]  ;;  %v125_v14 = vld [vmem:[#allocation5 + $0x18] sm:$0xff] }
  0x31   :  { %154 = vmatpush.msra.mxu0 %v129_v50  ;;  %233 = vmatpush.msra.mxu2 %v206_v52  ;;  %v102_v3 = vld [vmem:[#allocation2] sm:$0xff]  ;;  %v105_v15 = vld [vmem:[#allocation2 + $0x18] sm:$0xff] }
  0x32   :  { %183 = vmatpush.msra.mxu1 %v109_v51  ;;  %286 = vmatpush.msra.mxu3 %v259_v53  ;;  %v351_v22 = vld [vmem:[%s591_s5] ss:$0 sm:$0xff]  ;;  %s511_s5 = smov [#allocation11]  }
  0x33   :  { %155 = vmatpush.msra.mxu0 %v128_v54  ;;  %234 = vmatpush.msra.mxu2 %v205_v56  ;;  %s326_s21 = sshll.u32 %s511_s5, 4  ;;  %s327_s21 = int_to_ptr.vmem [resolvable:$true] %s326_s21 }
  0x34   :  { %184 = vmatpush.msra.mxu1 %v108_v55  ;;  %287 = vmatpush.msra.mxu3 %v258_v57 }
  0x35   :  { %156 = vmatpush.msra.mxu0 %v127_v58  ;;  %235 = vmatpush.msra.mxu2 %v204_v60 }
  0x36   :  { %185 = vmatpush.msra.mxu1 %v107_v59  ;;  %288 = vmatpush.msra.mxu3 %v257_v61 }
  0x37   :  { %236 = vmatmul.f32.vlgmr.msra.gmra.mxu2 %v200_v62  ;;  %289 = vmatmul.f32.vlgmr.msra.gmra.mxu3 %v253_v63 }
  0x38   :  { %157 = vmatpush.msra.mxu0 %v126_v0  ;;  %186 = vmatpush.msra.mxu1 %v106_v1 }
  0x39   :  { %158 = vmatmul.f32.vlgmr.msra.gmra.mxu0 %v122_v2  ;;  %187 = vmatmul.f32.vlgmr.msra.gmra.mxu1 %v102_v3 }
  0x3f   :  { %239 = vmatmul.f32.gmra.mxu2 %v201_v4  ;;  %292 = vmatmul.f32.gmra.mxu3 %v254_v5 }
  0x41   :  { %161 = vmatmul.f32.gmra.mxu0 %v123_v6  ;;  %190 = vmatmul.f32.gmra.mxu1 %v103_v7 }
  0x47   :  { %242 = vmatmul.f32.gmra.mxu2 %v202_v8  ;;  %295 = vmatmul.f32.gmra.mxu3 %v255_v9 }
  0x49   :  { %164 = vmatmul.f32.gmra.mxu0 %v124_v10  ;;  %193 = vmatmul.f32.gmra.mxu1 %v104_v11 }
  0x4f   :  { %245 = vmatmul.f32.gmra.mxu2 %v203_v12  ;;  %298 = vmatmul.f32.gmra.mxu3 %v256_v13 }
  0x51   :  { %167 = vmatmul.f32.gmra.mxu0 %v125_v14  ;;  %196 = vmatmul.f32.gmra.mxu1 %v105_v15 }
  0xb6   :  { %v159_v16 = vpop.f32.mrf.mxu0  ;;  %v188_v17 = vpop.f32.mrf.mxu1 }
  0xb7   :  { %v189_v18 = vadd.f32 %v188_v17, %v159_v16 }
  0xba   :  { %v237_v19 = vpop.f32.mrf.mxu2  ;;  %v290_v20 = vpop.f32.mrf.mxu3 }
  0xbb   :  { %v249_v21 = vadd.f32 %v237_v19, %v189_v18 }
  0xbd   :  { %v302_v23 = vadd.f32 %v290_v20, %v249_v21 }
  0xbe   :  { %v162_v24 = vpop.f32.mrf.mxu0  ;;  %v191_v25 = vpop.f32.mrf.mxu1 }
  0xbf   :  { %v310_v26 = vadd.f32 %v351_v22, %v302_v23  ;;  %v192_v27 = vadd.f32 %v191_v25, %v162_v24 }
  0xc1   :  { %v314_v28 = vmax.f32 %v310_v26, 0.0 }
  0xc2   :  { %v240_v29 = vpop.f32.mrf.mxu2  ;;  %v293_v30 = vpop.f32.mrf.mxu3 }
  0xc3   :  { %318 = vst [vmem:[#allocation11] sm:$0xff] %v314_v28  ;;  %v250_v31 = vadd.f32 %v240_v29, %v192_v27 }
  0xc5   :  { %v303_v32 = vadd.f32 %v293_v30, %v250_v31 }
  0xc6   :  { %v165_v33 = vpop.f32.mrf.mxu0  ;;  %v194_v34 = vpop.f32.mrf.mxu1 }
  0xc7   :  { %v311_v35 = vadd.f32 %v351_v22, %v303_v32  ;;  %v195_v36 = vadd.f32 %v194_v34, %v165_v33 }
  0xc9   :  { %v315_v37 = vmax.f32 %v311_v35, 0.0 }
  0xca   :  { %v243_v38 = vpop.f32.mrf.mxu2  ;;  %v296_v39 = vpop.f32.mrf.mxu3 }
  0xcb   :  { %319 = vst [vmem:[#allocation11 + $0x8] sm:$0xff] %v315_v37  ;;  %v251_v40 = vadd.f32 %v243_v38, %v195_v36 }
  0xcd   :  { %v304_v41 = vadd.f32 %v296_v39, %v251_v40 }
  0xce   :  { %v168_v42 = vpop.f32.mrf.mxu0  ;;  %v197_v43 = vpop.f32.mrf.mxu1 }
  0xcf   :  { %v312_v44 = vadd.f32 %v351_v22, %v304_v41  ;;  %v198_v45 = vadd.f32 %v197_v43, %v168_v42 }
  0xd1   :  { %v316_v46 = vmax.f32 %v312_v44, 0.0 }
  0xd2   :  { %v246_v47 = vpop.f32.mrf.mxu2  ;;  %v299_v48 = vpop.f32.mrf.mxu3 }
  0xd3   :  { %320 = vst [vmem:[#allocation11 + $0x10] sm:$0xff] %v316_v46  ;;  %v252_v49 = vadd.f32 %v246_v47, %v198_v45 }
  0xd5   :  { %v305_v50 = vadd.f32 %v299_v48, %v252_v49 }
  0xd7   :  { %v313_v51 = vadd.f32 %v351_v22, %v305_v50 }
  0xd9   :  { %v317_v52 = vmax.f32 %v313_v51, 0.0 }
  0xdb   :  { %321 = vst [vmem:[#allocation11 + $0x18] sm:$0xff] %v317_v52 }
  0xdc   :  { %334 = dma.vmem_to_hbm [thread:$0]  %s327_s21, 512, %s329_s24, [#allocation4], %s505_s29, %s505_s29, %s506_s30  }
  0xdd   :  { %502 = dma.done.wait [#allocation4], 512  }
  0xde   :  { %503 = vsyncadd [#allocation4], 4294966784 }
  0xdf   :  { %339 = vsyncpa [#allocation3], 1 }
  0xe0   :  { %340 = vsyncpa [#allocation6], 1 }
  0xe1   :  { %341 = vsyncpa [#allocation9], 1 }
  0xe2   :  { %342 = vsyncpa [#allocation4], 1 }

</bundles_post_ra>
